<compile_context>
chip_gen: v6e
topology: v6e:2x2x1
jax: 0.10.0
libtpu: 0.0.40
codegen_flags: <defaults>
</compile_context>

<pallas_src>
import jax
import jax.numpy as jnp
from jax.experimental import pallas as pl
from jax.experimental.pallas import tpu as pltpu


def _linear_decoder_kernel(z_ref, w_ref, lib_ref, scale_ref, rate_ref, raw_ref):
    # Linear (no bias): raw = z @ W^T (w_ref holds W^T, shape (n_in, n_out)).
    # bf16 operands on the MXU, f32 accumulation.
    raw = jnp.dot(z_ref[...], w_ref[...], preferred_element_type=jnp.float32)
    raw_ref[...] = raw.astype(raw_ref.dtype)

    # Row-wise softmax over the full n_output axis (entire axis lives in this block).
    # The epilogue is staged through scale_ref so `raw`, `e` and `px_scale` are never
    # three simultaneous f32 (block_b, n_out) temporaries.
    m = jnp.max(raw, axis=-1, keepdims=True)
    scale_ref[...] = jnp.exp(raw - m).astype(scale_ref.dtype)          # unnormalized e
    s = jnp.sum(scale_ref[...].astype(jnp.float32), axis=-1, keepdims=True)
    inv = pl.reciprocal(s, approx=True)                                # EUP slot (free-ish)

    lib_e = jnp.exp(lib_ref[...].astype(jnp.float32))                  # (block_b, 1), once per tile
    px = scale_ref[...].astype(jnp.float32) * inv
    scale_ref[...] = px.astype(scale_ref.dtype)
    rate_ref[...] = (lib_e * px).astype(rate_ref.dtype)


def _round_up(x, m):
    return ((x + m - 1) // m) * m


def _vmem_capacity_bytes():
    """Physical per-core VMEM; conservative (v7x-sized) fallback if the query fails."""
    try:
        return int(pltpu.get_tpu_info().vmem_capacity_bytes)
    except Exception:
        return 64 * 1024 * 1024


def _has_two_tensorcores():
    """True on parts where ('parallel',) grid axes shard across 2 TensorCores."""
    try:
        kind = jax.devices()[0].device_kind.lower()
        return ("v4" in kind) or ("v5p" in kind) or ("7" in kind)
    except Exception:
        return False


def _pick_block_b(B, n_in, n_out, in_bytes, out_row_bytes, weight_copies, budget, two_tc):
    """Pick a batch tile that fills the generation-aware VMEM budget."""
    if B <= 8:
        return B  # single full block; block dim == full array dim satisfies (8,128) rule

    weight_bytes = weight_copies * n_in * n_out * in_bytes
    per_row = (2 * n_in * in_bytes        # z tile, double-buffered
               + 2 * out_row_bytes        # all outputs, double-buffered
               + 2 * n_out * 4            # f32 epilogue temporaries (in-place softmax)
               + 2 * 4)                   # library tile
    avail = budget - weight_bytes
    if avail <= 8 * per_row:
        block = 8
    else:
        block = min(1024, (avail // per_row) // 8 * 8)
    block = max(8, min(block, _round_up(B, 8)))

    # Only split a single-tile batch on parts with 2 TensorCores (on 1-TC chips the
    # split just adds a pipeline step of overhead with zero parallelism).
    if two_tc and block >= _round_up(B, 8) and B >= 16:
        block = max(8, _round_up(pl.cdiv(B, 2), 8))
    return block


def linear_decoder_forward(z, w_t, library, *, block_b=None,
                           matmul_dtype=jnp.bfloat16,
                           out_dtype=jnp.float32,
                           raw_dtype=jnp.bfloat16):
    """Pallas implementation of LinearDecoder.forward.

    Args:
      z:       (B, n_input)
      w_t:     (n_input, n_output) -- transposed nn.Linear weight (no bias).
               Pre-cast to `matmul_dtype` at model setup to avoid a per-call cast.
      library: (B, 1)

    Returns:
      (px_scale, px_rate, raw_px_scale) with shapes (B, n_output);
      px_scale/px_rate in `out_dtype` (default f32), raw in `raw_dtype` (default bf16).
    """
    B, n_in = z.shape
    n_out = w_t.shape[1]
    in_bytes = jnp.dtype(matmul_dtype).itemsize
    out_row_bytes = n_out * (2 * jnp.dtype(out_dtype).itemsize
                             + jnp.dtype(raw_dtype).itemsize)

    vmem_cap = _vmem_capacity_bytes()
    budget = int(0.70 * vmem_cap)          # tiling budget (~45 MiB on v7x, ~90 MiB on 128 MiB parts)
    limit_cap = int(0.85 * vmem_cap)       # never request the full physical VMEM
    two_tc = _has_two_tensorcores()

    # Weight cast hoisting: only cast here if the caller did not pre-cast at setup.
    w_mm = w_t if w_t.dtype == matmul_dtype else w_t.astype(matmul_dtype)
    z_mm = z.astype(matmul_dtype)
    lib = library.astype(jnp.float32)

    # Note: if the real gene count n_out is not a multiple of 128, padding the weight
    # columns (and masking padded logits to -inf) would enable lane-dense stores.
    # TODO(synk): weight-column padding path for non-128-multiple n_out.

    def run(weight_buffer_count):
        wcopies = 1 if weight_buffer_count == 1 else 2
        bb = block_b if block_b is not None else _pick_block_b(
            B, n_in, n_out, in_bytes, out_row_bytes, wcopies, budget, two_tc)
        grid_b = pl.cdiv(B, bb)

        vmem_est = (2 * bb * n_in * in_bytes          # z, double-buffered
                    + wcopies * n_in * n_out * in_bytes
                    + 2 * bb * out_row_bytes          # outputs, double-buffered
                    + 2 * bb * 4                      # library
                    + 2 * bb * n_out * 4)             # f32 temporaries headroom
        vmem_limit = int(min(limit_cap, max(32 * 1024 * 1024, vmem_est + (8 << 20))))

        w_kwargs = {}
        if weight_buffer_count is not None:
            # Constant index_map -> DMA'd once; single buffer frees n_in*n_out*in_bytes.
            w_kwargs = dict(pipeline_mode=pl.Buffered(weight_buffer_count))
        w_spec = pl.BlockSpec((n_in, n_out), lambda i: (0, 0), **w_kwargs)
        out_block = pl.BlockSpec((bb, n_out), lambda i: (i, 0))

        return pl.pallas_call(
            _linear_decoder_kernel,
            out_shape=(
                jax.ShapeDtypeStruct((B, n_out), out_dtype),   # px_scale
                jax.ShapeDtypeStruct((B, n_out), out_dtype),   # px_rate
                jax.ShapeDtypeStruct((B, n_out), raw_dtype),   # raw_px_scale
            ),
            grid_spec=pltpu.PrefetchScalarGridSpec(
                num_scalar_prefetch=0,
                grid=(grid_b,),
                in_specs=[
                    pl.BlockSpec((bb, n_in), lambda i: (i, 0)),   # z tile
                    w_spec,                                       # full weight, resident
                    pl.BlockSpec((bb, 1), lambda i: (i, 0)),      # library tile
                ],
                out_specs=[out_block, out_block, out_block],
            ),
            compiler_params=pltpu.CompilerParams(
                dimension_semantics=("parallel",),
                vmem_limit_bytes=vmem_limit),
        )(z_mm, w_mm, lib)

    try:
        return run(1)          # single-buffered resident weight
    except Exception:
        return run(None)       # fallback: default (double) buffering for the weight


if __name__ == "__main__":
    key = jax.random.PRNGKey(0)
    n_input, n_output = 32, 256
    k_z, k_w, k_l, k_z2, k_l2 = jax.random.split(key, 5)

    # nn.Linear(n_input, n_output, bias=False) weight, PyTorch layout (n_out, n_in).
    w = jax.random.normal(k_w, (n_output, n_input), dtype=jnp.float32) * 0.05
    # "Model setup": transpose + bf16 cast hoisted out of the per-call path.
    w_t_bf16 = w.T.astype(jnp.bfloat16)

    def reference(z, library):
        raw = z @ w.T
        scale = jax.nn.softmax(raw, axis=-1)
        rate = jnp.exp(library) * scale
        return scale, rate, raw

    # Case 1: batch fits one full tile.
    B = 8
    z = jax.random.normal(k_z, (B, n_input), dtype=jnp.float32)
    library = jax.random.normal(k_l, (B, 1), dtype=jnp.float32)
    px_scale, px_rate, raw_px = jax.block_until_ready(
        linear_decoder_forward(z, w_t_bf16, library))
    scale_r, rate_r, raw_r = reference(z, library)
    assert px_scale.shape == (B, n_output) and px_rate.shape == (B, n_output)
    assert jnp.allclose(px_scale, scale_r, atol=1e-4, rtol=1e-2), "scale mismatch"
    assert jnp.allclose(px_rate, rate_r, atol=1e-3, rtol=1e-2), "rate mismatch"
    assert jnp.allclose(raw_px.astype(jnp.float32), raw_r, atol=2e-2, rtol=5e-2), "raw mismatch"

    # Case 2: batch NOT divisible by the tile -> partial last grid block,
    # no wrapper-side pad / slice copies.
    B2 = 20
    z2 = jax.random.normal(k_z2, (B2, n_input), dtype=jnp.float32)
    library2 = jax.random.normal(k_l2, (B2, 1), dtype=jnp.float32)
    px_scale2, px_rate2, raw_px2 = jax.block_until_ready(
        linear_decoder_forward(z2, w_t_bf16, library2, block_b=8))
    scale_r2, rate_r2, raw_r2 = reference(z2, library2)
    assert px_scale2.shape == (B2, n_output)
    assert jnp.allclose(px_scale2, scale_r2, atol=1e-4, rtol=1e-2), "scale mismatch (partial)"
    assert jnp.allclose(px_rate2, rate_r2, atol=1e-3, rtol=1e-2), "rate mismatch (partial)"
    assert jnp.allclose(raw_px2.astype(jnp.float32), raw_r2, atol=2e-2, rtol=5e-2), "raw mismatch (partial)"

    print("KERNEL_OK")
</pallas_src>

<mosaic_0001>
module attributes {stable_mosaic.version = 11 : i64} {
  func.func @_linear_decoder_kernel(%arg0: i32, %arg1: memref<8x32xbf16, #tpu.memory_space<vmem>>, %arg2: memref<32x256xbf16, #tpu.memory_space<vmem>>, %arg3: memref<8x1xf32, #tpu.memory_space<vmem>>, %arg4: memref<8x256xf32, #tpu.memory_space<vmem>>, %arg5: memref<8x256xf32, #tpu.memory_space<vmem>>, %arg6: memref<8x256xbf16, #tpu.memory_space<vmem>>) attributes {dimension_semantics = [#tpu.dimension_semantics<parallel>], iteration_bounds = array<i64: 1>, scalar_prefetch = 0 : i64, scratch_operands = 0 : i64, tpu.core_type = #tpu.core_type<tc>, window_params = [{transform_indices = @transform_0, window_bounds = array<i64: 8, 32>}, {pipeline_mode = #tpu.pipeline_mode<synchronous>, transform_indices = @transform_1, window_bounds = array<i64: 32, 256>}, {transform_indices = @transform_2, window_bounds = array<i64: 8, 1>}, {transform_indices = @transform_3, window_bounds = array<i64: 8, 256>}, {transform_indices = @transform_4, window_bounds = array<i64: 8, 256>}, {transform_indices = @transform_5, window_bounds = array<i64: 8, 256>}]} {
    %c0 = arith.constant 0 : index
    %c0_0 = arith.constant 0 : index
    %0 = vector.load %arg1[%c0, %c0_0] : memref<8x32xbf16, #tpu.memory_space<vmem>>, vector<8x32xbf16>
    %c0_1 = arith.constant 0 : index
    %c0_2 = arith.constant 0 : index
    %1 = vector.load %arg2[%c0_1, %c0_2] : memref<32x256xbf16, #tpu.memory_space<vmem>>, vector<32x256xbf16>
    %cst = arith.constant dense<0.000000e+00> : vector<8x256xf32>
    %2 = tpu.matmul %0, %1, %cst {dimension_numbers = #tpu.dot_dimension_numbers<[1], [0], [0], [1], [0, 0, 1, 1], [], []>} : vector<8x32xbf16>, vector<32x256xbf16>, vector<8x256xf32> -> vector<8x256xf32>
    %3 = arith.truncf %2 : vector<8x256xf32> to vector<8x256xbf16>
    %c0_3 = arith.constant 0 : index
    %c0_4 = arith.constant 0 : index
    %4 = vector.load %arg6[%c0_3, %c0_4] : memref<8x256xbf16, #tpu.memory_space<vmem>>, vector<8x256xbf16>
    tpu.vector_store %arg6[%c0_3, %c0_4], %3 {strides = array<i32>} : memref<8x256xbf16, #tpu.memory_space<vmem>>, vector<8x256xbf16>,
    %cst_5 = arith.constant dense<0xFF800000> : vector<8xf32>
    %5 = vector.multi_reduction <maximumf>, %2, %cst_5 [1] : vector<8x256xf32> to vector<8xf32>
    %6 = vector.shape_cast %5 : vector<8xf32> to vector<8x1xf32>
    %7 = vector.broadcast %6 : vector<8x1xf32> to vector<8x256xf32>
    %8 = arith.subf %2, %7 : vector<8x256xf32>
    %9 = math.exp %8 : vector<8x256xf32>
    %c0_6 = arith.constant 0 : index
    %c0_7 = arith.constant 0 : index
    %10 = vector.load %arg4[%c0_6, %c0_7] : memref<8x256xf32, #tpu.memory_space<vmem>>, vector<8x256xf32>
    tpu.vector_store %arg4[%c0_6, %c0_7], %9 {strides = array<i32>} : memref<8x256xf32, #tpu.memory_space<vmem>>, vector<8x256xf32>,
    %c0_8 = arith.constant 0 : index
    %c0_9 = arith.constant 0 : index
    %11 = vector.load %arg4[%c0_8, %c0_9] : memref<8x256xf32, #tpu.memory_space<vmem>>, vector<8x256xf32>
    %cst_10 = arith.constant dense<0.000000e+00> : vector<8xf32>
    %12 = vector.multi_reduction <add>, %11, %cst_10 [1] : vector<8x256xf32> to vector<8xf32>
    %13 = vector.shape_cast %12 : vector<8xf32> to vector<8x1xf32>
    %14 = tpu.reciprocal %13 {approx = true} : vector<8x1xf32> -> vector<8x1xf32>
    %c0_11 = arith.constant 0 : index
    %c0_12 = arith.constant 0 : index
    %15 = vector.load %arg3[%c0_11, %c0_12] : memref<8x1xf32, #tpu.memory_space<vmem>>, vector<8x1xf32>
    %16 = math.exp %15 : vector<8x1xf32>
    %c0_13 = arith.constant 0 : index
    %c0_14 = arith.constant 0 : index
    %17 = vector.load %arg4[%c0_13, %c0_14] : memref<8x256xf32, #tpu.memory_space<vmem>>, vector<8x256xf32>
    %18 = vector.broadcast %14 : vector<8x1xf32> to vector<8x256xf32>
    %19 = arith.mulf %17, %18 : vector<8x256xf32>
    %c0_15 = arith.constant 0 : index
    %c0_16 = arith.constant 0 : index
    %20 = vector.load %arg4[%c0_15, %c0_16] : memref<8x256xf32, #tpu.memory_space<vmem>>, vector<8x256xf32>
    tpu.vector_store %arg4[%c0_15, %c0_16], %19 {strides = array<i32>} : memref<8x256xf32, #tpu.memory_space<vmem>>, vector<8x256xf32>,
    %21 = vector.broadcast %16 : vector<8x1xf32> to vector<8x256xf32>
    %22 = arith.mulf %21, %19 : vector<8x256xf32>
    %c0_17 = arith.constant 0 : index
    %c0_18 = arith.constant 0 : index
    %23 = vector.load %arg5[%c0_17, %c0_18] : memref<8x256xf32, #tpu.memory_space<vmem>>, vector<8x256xf32>
    tpu.vector_store %arg5[%c0_17, %c0_18], %22 {strides = array<i32>} : memref<8x256xf32, #tpu.memory_space<vmem>>, vector<8x256xf32>,
    return
  }
  func.func @transform_0(%arg0: i32) -> (i32, i32) {
    %c0_i32 = arith.constant 0 : i32
    %c0_i32_0 = arith.constant 0 : i32
    return %arg0, %c0_i32 : i32, i32
  }
  func.func @transform_1(%arg0: i32) -> (i32, i32) {
    %c0_i32 = arith.constant 0 : i32
    %c0_i32_0 = arith.constant 0 : i32
    %c0_i32_1 = arith.constant 0 : i32
    return %c0_i32, %c0_i32_0 : i32, i32
  }
  func.func @transform_2(%arg0: i32) -> (i32, i32) {
    %c0_i32 = arith.constant 0 : i32
    %c0_i32_0 = arith.constant 0 : i32
    return %arg0, %c0_i32 : i32, i32
  }
  func.func @transform_3(%arg0: i32) -> (i32, i32) {
    %c0_i32 = arith.constant 0 : i32
    %c0_i32_0 = arith.constant 0 : i32
    return %arg0, %c0_i32 : i32, i32
  }
  func.func @transform_4(%arg0: i32) -> (i32, i32) {
    %c0_i32 = arith.constant 0 : i32
    %c0_i32_0 = arith.constant 0 : i32
    return %arg0, %c0_i32 : i32, i32
  }
  func.func @transform_5(%arg0: i32) -> (i32, i32) {
    %c0_i32 = arith.constant 0 : i32
    %c0_i32_0 = arith.constant 0 : i32
    return %arg0, %c0_i32 : i32, i32
  }
}

module attributes {stable_mosaic.version = 11 : i64} {
  func.func @_linear_decoder_kernel(%arg0: i32, %arg1: memref<8x32xbf16, #tpu.memory_space<vmem>>, %arg2: memref<32x256xbf16, #tpu.memory_space<vmem>>, %arg3: memref<8x1xf32, #tpu.memory_space<vmem>>, %arg4: memref<8x256xf32, #tpu.memory_space<vmem>>, %arg5: memref<8x256xf32, #tpu.memory_space<vmem>>, %arg6: memref<8x256xbf16, #tpu.memory_space<vmem>>) attributes {dimension_semantics = [#tpu.dimension_semantics<parallel>], iteration_bounds = array<i64: 1>, scalar_prefetch = 0 : i64, scratch_operands = 0 : i64, tpu.core_type = #tpu.core_type<tc>, window_params = [{transform_indices = @transform_0, window_bounds = array<i64: 8, 32>}, {pipeline_mode = #tpu.pipeline_mode<synchronous>, transform_indices = @transform_1, window_bounds = array<i64: 32, 256>}, {transform_indices = @transform_2, window_bounds = array<i64: 8, 1>}, {transform_indices = @transform_3, window_bounds = array<i64: 8, 256>}, {transform_indices = @transform_4, window_bounds = array<i64: 8, 256>}, {transform_indices = @transform_5, window_bounds = array<i64: 8, 256>}]} {
    %c0 = arith.constant 0 : index
    %c0_0 = arith.constant 0 : index
    %0 = vector.load %arg1[%c0, %c0_0] : memref<8x32xbf16, #tpu.memory_space<vmem>>, vector<8x32xbf16>
    %c0_1 = arith.constant 0 : index
    %c0_2 = arith.constant 0 : index
    %1 = vector.load %arg2[%c0_1, %c0_2] : memref<32x256xbf16, #tpu.memory_space<vmem>>, vector<32x256xbf16>
    %cst = arith.constant dense<0.000000e+00> : vector<8x256xf32>
    %2 = tpu.matmul %0, %1, %cst {dimension_numbers = #tpu.dot_dimension_numbers<[1], [0], [0], [1], [0, 0, 1, 1], [], []>} : vector<8x32xbf16>, vector<32x256xbf16>, vector<8x256xf32> -> vector<8x256xf32>
    %3 = arith.truncf %2 : vector<8x256xf32> to vector<8x256xbf16>
    %c0_3 = arith.constant 0 : index
    %c0_4 = arith.constant 0 : index
    %4 = vector.load %arg6[%c0_3, %c0_4] : memref<8x256xbf16, #tpu.memory_space<vmem>>, vector<8x256xbf16>
    tpu.vector_store %arg6[%c0_3, %c0_4], %3 {strides = array<i32>} : memref<8x256xbf16, #tpu.memory_space<vmem>>, vector<8x256xbf16>,
    %cst_5 = arith.constant dense<0xFF800000> : vector<8xf32>
    %5 = vector.multi_reduction <maximumf>, %2, %cst_5 [1] : vector<8x256xf32> to vector<8xf32>
    %6 = vector.shape_cast %5 : vector<8xf32> to vector<8x1xf32>
    %7 = vector.broadcast %6 : vector<8x1xf32> to vector<8x256xf32>
    %8 = arith.subf %2, %7 : vector<8x256xf32>
    %9 = math.exp %8 : vector<8x256xf32>
    %c0_6 = arith.constant 0 : index
    %c0_7 = arith.constant 0 : index
    %10 = vector.load %arg4[%c0_6, %c0_7] : memref<8x256xf32, #tpu.memory_space<vmem>>, vector<8x256xf32>
    tpu.vector_store %arg4[%c0_6, %c0_7], %9 {strides = array<i32>} : memref<8x256xf32, #tpu.memory_space<vmem>>, vector<8x256xf32>,
    %c0_8 = arith.constant 0 : index
    %c0_9 = arith.constant 0 : index
    %11 = vector.load %arg4[%c0_8, %c0_9] : memref<8x256xf32, #tpu.memory_space<vmem>>, vector<8x256xf32>
    %cst_10 = arith.constant dense<0.000000e+00> : vector<8xf32>
    %12 = vector.multi_reduction <add>, %11, %cst_10 [1] : vector<8x256xf32> to vector<8xf32>
    %13 = vector.shape_cast %12 : vector<8xf32> to vector<8x1xf32>
    %14 = tpu.reciprocal %13 {approx = true} : vector<8x1xf32> -> vector<8x1xf32>
    %c0_11 = arith.constant 0 : index
    %c0_12 = arith.constant 0 : index
    %15 = vector.load %arg3[%c0_11, %c0_12] : memref<8x1xf32, #tpu.memory_space<vmem>>, vector<8x1xf32>
    %16 = math.exp %15 : vector<8x1xf32>
    %c0_13 = arith.constant 0 : index
    %c0_14 = arith.constant 0 : index
    %17 = vector.load %arg4[%c0_13, %c0_14] : memref<8x256xf32, #tpu.memory_space<vmem>>, vector<8x256xf32>
    %18 = vector.broadcast %14 : vector<8x1xf32> to vector<8x256xf32>
    %19 = arith.mulf %17, %18 : vector<8x256xf32>
    %c0_15 = arith.constant 0 : index
    %c0_16 = arith.constant 0 : index
    %20 = vector.load %arg4[%c0_15, %c0_16] : memref<8x256xf32, #tpu.memory_space<vmem>>, vector<8x256xf32>
    tpu.vector_store %arg4[%c0_15, %c0_16], %19 {strides = array<i32>} : memref<8x256xf32, #tpu.memory_space<vmem>>, vector<8x256xf32>,
    %21 = vector.broadcast %16 : vector<8x1xf32> to vector<8x256xf32>
    %22 = arith.mulf %21, %19 : vector<8x256xf32>
    %c0_17 = arith.constant 0 : index
    %c0_18 = arith.constant 0 : index
    %23 = vector.load %arg5[%c0_17, %c0_18] : memref<8x256xf32, #tpu.memory_space<vmem>>, vector<8x256xf32>
    tpu.vector_store %arg5[%c0_17, %c0_18], %22 {strides = array<i32>} : memref<8x256xf32, #tpu.memory_space<vmem>>, vector<8x256xf32>,
    return
  }
  func.func @transform_0(%arg0: i32) -> (i32, i32) {
    %c0_i32 = arith.constant 0 : i32
    %c0_i32_0 = arith.constant 0 : i32
    return %arg0, %c0_i32 : i32, i32
  }
  func.func @transform_1(%arg0: i32) -> (i32, i32) {
    %c0_i32 = arith.constant 0 : i32
    %c0_i32_0 = arith.constant 0 : i32
    %c0_i32_1 = arith.constant 0 : i32
    return %c0_i32, %c0_i32_0 : i32, i32
  }
  func.func @transform_2(%arg0: i32) -> (i32, i32) {
    %c0_i32 = arith.constant 0 : i32
    %c0_i32_0 = arith.constant 0 : i32
    return %arg0, %c0_i32 : i32, i32
  }
  func.func @transform_3(%arg0: i32) -> (i32, i32) {
    %c0_i32 = arith.constant 0 : i32
    %c0_i32_0 = arith.constant 0 : i32
    return %arg0, %c0_i32 : i32, i32
  }
  func.func @transform_4(%arg0: i32) -> (i32, i32) {
    %c0_i32 = arith.constant 0 : i32
    %c0_i32_0 = arith.constant 0 : i32
    return %arg0, %c0_i32 : i32, i32
  }
  func.func @transform_5(%arg0: i32) -> (i32, i32) {
    %c0_i32 = arith.constant 0 : i32
    %c0_i32_0 = arith.constant 0 : i32
    return %arg0, %c0_i32 : i32, i32
  }
}

</mosaic_0001>

<bundles_post_ra>
// kernel: tpu_custom_call.1
= control target key start
LH: loop header
LB: loop body
LE: loop exit
PB: predicated region body
PF: predicated region fallthrough
CT: control target
= control target key end

     0   :  { %11 = vsyncpa [#allocation3], 0  ;;  %s359_s0 = inlined_call_operand.vmem [shape: bf16[8,32], index: 0, kind: input, shape index: {}]   ;;  %s360_s1 = inlined_call_operand.hbm [shape: bf16[32,256], index: 1, kind: input, shape index: {}]   ;;  %s361_s2 = inlined_call_operand.vmem [shape: f32[8,1], index: 2, kind: input, shape index: {}]   ;;  %s362_s3 = inlined_call_operand.hbm [shape: f32[8,256], index: 3, kind: output, shape index: {0}]   ;;  %s363_s4 = inlined_call_operand.hbm [shape: f32[8,256], index: 4, kind: output, shape index: {1}]   ;;  %s364_s5 = inlined_call_operand.hbm [shape: bf16[8,256], index: 5, kind: output, shape index: {2}]  }
   0x1   :  { %12 = vsyncpa [#allocation4], 0 }
   0x2   :  { %13 = vsyncpa [#allocation7], 0  ;;  %s304_s18 = smov [#allocation2]  }
   0x3   :  { %s21_s19 = sshll.u32 %s304_s18, 4  ;;  %s22_s19 = int_to_ptr.vmem [resolvable:$true] %s21_s19 }
   0x4   :  { %s226_s20 = scalar_lea.vmem %s22_s19, 512  ;;  %p231_p1 = scmp.lt.s32.totalorder %s22_s19, %s22_s19 }
   0x5   :  { %p227_p0 = scmp.ne.s32.totalorder %s22_s19, %s226_s20  ;;  %p232_p2 = scmp.lt.s32.totalorder %s226_s20, %s226_s20 }
   0x7   :  { %p233_p3 = por %p232_p2, %p231_p1 }
   0x9   :  { %p234_p4 = pnand %p233_p3, %p227_p0 }
   0xb   :  { %237 = shalt.err (!%p234_p4)
}
   0xc   :  { %s305_s21 = smov 128   ;;  %s306_s22 = smov 8  }
   0xd   :  { %27 = dma.hbm_to_vmem [thread:$0]  %s360_s1, 512, %s22_s19, [#allocation3], %s305_s21, %s305_s21, %s306_s22  }
   0xe   :  { %298 = dma.done.wait [#allocation3], 512  }
   0xf   :  { %299 = vsyncadd [#allocation3], 4294966784  ;;  %v307_v0 = vmov 0   ;;  %v204_v1 = vld [vmem:[#allocation2 + $0x14] ss:$8 sps:$4 sm:$0xff]   ;;  %vm59_vm0 = vcmask 261120  }
  0x10   :  { %95 = vmatprep.mubr.bf16.mxu0 %v307_v0  ;;  %202 = vset.pattern.permute.xlu1 %v307_v0  ;;  %v206_v2 = vld [vmem:[#allocation2 + $0x10] ss:$8 sps:$4 sm:$0xff]   ;;  %v207_v3 = vld [vmem:[#allocation2 + $0x4] ss:$8 sps:$4 sm:$0xff]   ;;  %v209_v4 = vld [vmem:[#allocation2] ss:$8 sps:$4 sm:$0xff]  }
  0x11   :  { %203 = vset.pattern.permute.xlu0 %v307_v0  ;;  %75 = vmatprep.subr.bf16.mxu0 %v204_v1  ;;  %v34_v5 = vld [vmem:[%s359_s0] sm:$0xf]  ;;  %s308_s0 = smov [#allocation5]   ;;  %s310_s30 = smov [#allocation8]  }
  0x12   :  { %76 = vmatpush1.bf16.msra.mxu0 %v206_v2  ;;  %v130_v12 = vld [vmem:[%s361_s2] sm:$0xff]  ;;  %s152_s28 = sshll.u32 %s308_s0, 4  ;;  %s309_s2 = smov [#allocation6]   ;;  %s153_s28 = int_to_ptr.vmem [resolvable:$true] %s152_s28 }
  0x13   :  { %77 = vmatprep.subr.bf16.mxu0 %v207_v3  ;;  %v131_v13 = vmul.f32 1.442695, %v130_v12  ;;  %s162_s29 = sshll.u32 %s309_s2, 4  ;;  %s172_s6 = sshll.u32 %s310_s30, 4  ;;  %s163_s29 = int_to_ptr.vmem [resolvable:$true] %s162_s29  ;;  %s173_s6 = int_to_ptr.vmem [resolvable:$true] %s172_s6 }
  0x14   :  { %s238_s7 = scalar_lea.vmem %s153_s28, 256  ;;  %p243_p6 = scmp.lt.s32.totalorder %s153_s28, %s153_s28 }
  0x15   :  { %210 = vpow2.f32 %v131_v13  ;;  %p239_p5 = scmp.ne.s32.totalorder %s153_s28, %s238_s7  ;;  %p244_p7 = scmp.lt.s32.totalorder %s238_s7, %s238_s7 }
  0x16   :  { %78 = vmatpush1.bf16.msra.mxu0 %v209_v4 }
  0x17   :  { %p245_p8 = por %p244_p7, %p243_p6 }
  0x19   :  { %192 = vmatmul.mubr.msk.bf16.vlgmr.msra.gmra.mxu0 %vm59_vm0, %v34_v5  ;;  %p246_p9 = pnand %p245_p8, %p239_p5 }
  0x22   :  { %v211_v14 = vpop.eup %210 }
  0x23   :  { %139 = vperm.xlu1 %202, %v211_v14  }
  0x9e   :  { %v140_v25 = vpop.permute.xlu1 %139 }
  0xd9   :  { %v97_v6 = vpop.f32.mrf.mxu0 }
  0xdb   :  { %v99_v7 = vpop.f32.mrf.mxu0 }
  0xdc   :  { %v194_v8 = vpack.c.bf16 %v99_v7, %v97_v6  ;;  %v113_v9 = vmax.f32 %v97_v6, %v99_v7 }
  0xdd   :  { %v101_v10 = vpop.f32.mrf.mxu0 }
  0xde   :  { %112 = vst [vmem:[#allocation8] sm:$0xff] %v194_v8  ;;  %114 = vmax.xlane.f32.xlu0 %v113_v9 }
  0xdf   :  { %v102_v11 = vpop.f32.mrf.mxu0 }
 0x167   :  { %v115_v15 = vpop.xlane.xlu0 %114 }
 0x168   :  { %v116_v16 = vsub.f32 %v97_v6, %v115_v15  ;;  %v117_v17 = vsub.f32 %v99_v7, %v115_v15 }
 0x16a   :  { %v118_v18 = vmul.f32 1.442695, %v116_v16  ;;  %v120_v19 = vmul.f32 1.442695, %v117_v17 }
 0x16c   :  { %212 = vpow2.f32 %v118_v18 }
 0x16d   :  { %214 = vpow2.f32 %v120_v19 }
 0x179   :  { %v213_v20 = vpop.eup %212 }
 0x17a   :  { %v215_v21 = vpop.eup %214 }
 0x17b   :  { %v126_v22 = vadd.f32 %v215_v21, %v213_v20 }
 0x17d   :  { %127 = vadd.xlane.f32.xlu0 %v126_v22 }
 0x206   :  { %v128_v23 = vpop.xlane.xlu0 %127 }
 0x207   :  { %216 = vrcp.f32 %v128_v23 }
 0x214   :  { %v217_v24 = vpop.eup %216 }
 0x215   :  { %v133_v26 = vmul.f32 %v217_v24, %v213_v20  ;;  %v134_v27 = vmul.f32 %v217_v24, %v215_v21 }
 0x217   :  { %v142_v28 = vmul.f32 %v140_v25, %v133_v26  ;;  %v143_v29 = vmul.f32 %v140_v25, %v134_v27  ;;  %135 = vst [vmem:[#allocation5] sm:$0xff] %v133_v26  ;;  %136 = vst [vmem:[#allocation5 + $0x8] sm:$0xff] %v134_v27 }
 0x218   :  { %249 = shalt.err (!%p246_p9)
}
 0x219   :  { %155 = dma.vmem_to_hbm [thread:$0]  %s153_s28, 256, %s362_s3, [#allocation4]   ;;  %144 = vst [vmem:[#allocation6] sm:$0xff] %v142_v28  ;;  %145 = vst [vmem:[#allocation6 + $0x8] sm:$0xff] %v143_v29 }
 0x21a   :  { %s258_s10 = scalar_lea.vmem %s163_s29, 256  ;;  %p263_p11 = scmp.lt.s32.totalorder %s163_s29, %s163_s29 }
 0x21b   :  { %p259_p10 = scmp.ne.s32.totalorder %s163_s29, %s258_s10  ;;  %p264_p12 = scmp.lt.s32.totalorder %s258_s10, %s258_s10 }
 0x21d   :  { %p265_p13 = por %p264_p12, %p263_p11 }
 0x21f   :  { %p266_p0 = pnand %p265_p13, %p259_p10 }
 0x221   :  { %269 = shalt.err (!%p266_p0)
}
 0x222   :  { %165 = dma.vmem_to_hbm [thread:$0]  %s163_s29, 256, %s363_s4, [#allocation7]  }
 0x223   :  { %s278_s13 = scalar_lea.vmem %s173_s6, 128  ;;  %p283_p2 = scmp.lt.s32.totalorder %s173_s6, %s173_s6 }
 0x224   :  { %p279_p1 = scmp.ne.s32.totalorder %s173_s6, %s278_s13  ;;  %p284_p3 = scmp.lt.s32.totalorder %s278_s13, %s278_s13 }
 0x226   :  { %p285_p4 = por %p284_p3, %p283_p2 }
 0x228   :  { %p286_p5 = pnand %p285_p4, %p279_p1 }
 0x22a   :  { %289 = shalt.err (!%p286_p5)
}
 0x22b   :  { %175 = dma.vmem_to_hbm [thread:$0]  %s173_s6, 128, %s364_s5, [#allocation7]  }
 0x22c   :  { %300 = dma.done.wait [#allocation4], 256  }
 0x22d   :  { %301 = vsyncadd [#allocation4], 4294967040 }
 0x22e   :  { %302 = dma.done.wait [#allocation7], 384  }
 0x22f   :  { %303 = vsyncadd [#allocation7], 4294966912 }
 0x230   :  { %185 = vsyncpa [#allocation3], 1 }
 0x231   :  { %186 = vsyncpa [#allocation4], 1 }
 0x232   :  { %187 = vsyncpa [#allocation7], 1 }

// kernel: tpu_custom_call.1
= control target key start
LH: loop header
LB: loop body
LE: loop exit
PB: predicated region body
PF: predicated region fallthrough
CT: control target
= control target key end

     0   :  { %11 = vsyncpa [#allocation3], 0  ;;  %s359_s0 = inlined_call_operand.vmem [shape: bf16[8,32], index: 0, kind: input, shape index: {}]   ;;  %s360_s1 = inlined_call_operand.hbm [shape: bf16[32,256], index: 1, kind: input, shape index: {}]   ;;  %s361_s2 = inlined_call_operand.vmem [shape: f32[8,1], index: 2, kind: input, shape index: {}]   ;;  %s362_s3 = inlined_call_operand.hbm [shape: f32[8,256], index: 3, kind: output, shape index: {0}]   ;;  %s363_s4 = inlined_call_operand.hbm [shape: f32[8,256], index: 4, kind: output, shape index: {1}]   ;;  %s364_s5 = inlined_call_operand.hbm [shape: bf16[8,256], index: 5, kind: output, shape index: {2}]  }
   0x1   :  { %12 = vsyncpa [#allocation4], 0 }
   0x2   :  { %13 = vsyncpa [#allocation7], 0  ;;  %s304_s18 = smov [#allocation2]  }
   0x3   :  { %s21_s19 = sshll.u32 %s304_s18, 4  ;;  %s22_s19 = int_to_ptr.vmem [resolvable:$true] %s21_s19 }
   0x4   :  { %s226_s20 = scalar_lea.vmem %s22_s19, 512  ;;  %p231_p1 = scmp.lt.s32.totalorder %s22_s19, %s22_s19 }
   0x5   :  { %p227_p0 = scmp.ne.s32.totalorder %s22_s19, %s226_s20  ;;  %p232_p2 = scmp.lt.s32.totalorder %s226_s20, %s226_s20 }
   0x7   :  { %p233_p3 = por %p232_p2, %p231_p1 }
   0x9   :  { %p234_p4 = pnand %p233_p3, %p227_p0 }
   0xb   :  { %237 = shalt.err (!%p234_p4)
}
   0xc   :  { %s305_s21 = smov 128   ;;  %s306_s22 = smov 8  }
   0xd   :  { %27 = dma.hbm_to_vmem [thread:$0]  %s360_s1, 512, %s22_s19, [#allocation3], %s305_s21, %s305_s21, %s306_s22  }
   0xe   :  { %298 = dma.done.wait [#allocation3], 512  }
   0xf   :  { %299 = vsyncadd [#allocation3], 4294966784  ;;  %v307_v0 = vmov 0   ;;  %v204_v1 = vld [vmem:[#allocation2 + $0x14] ss:$8 sps:$4 sm:$0xff]   ;;  %vm59_vm0 = vcmask 261120  }
  0x10   :  { %95 = vmatprep.mubr.bf16.mxu0 %v307_v0  ;;  %202 = vset.pattern.permute.xlu1 %v307_v0  ;;  %v206_v2 = vld [vmem:[#allocation2 + $0x10] ss:$8 sps:$4 sm:$0xff]   ;;  %v207_v3 = vld [vmem:[#allocation2 + $0x4] ss:$8 sps:$4 sm:$0xff]   ;;  %v209_v4 = vld [vmem:[#allocation2] ss:$8 sps:$4 sm:$0xff]  }
  0x11   :  { %203 = vset.pattern.permute.xlu0 %v307_v0  ;;  %75 = vmatprep.subr.bf16.mxu0 %v204_v1  ;;  %v34_v5 = vld [vmem:[%s359_s0] sm:$0xf]  ;;  %s308_s0 = smov [#allocation5]   ;;  %s310_s30 = smov [#allocation8]  }
  0x12   :  { %76 = vmatpush1.bf16.msra.mxu0 %v206_v2  ;;  %v130_v12 = vld [vmem:[%s361_s2] sm:$0xff]  ;;  %s152_s28 = sshll.u32 %s308_s0, 4  ;;  %s309_s2 = smov [#allocation6]   ;;  %s153_s28 = int_to_ptr.vmem [resolvable:$true] %s152_s28 }
  0x13   :  { %77 = vmatprep.subr.bf16.mxu0 %v207_v3  ;;  %v131_v13 = vmul.f32 1.442695, %v130_v12  ;;  %s162_s29 = sshll.u32 %s309_s2, 4  ;;  %s172_s6 = sshll.u32 %s310_s30, 4  ;;  %s163_s29 = int_to_ptr.vmem [resolvable:$true] %s162_s29  ;;  %s173_s6 = int_to_ptr.vmem [resolvable:$true] %s172_s6 }
  0x14   :  { %s238_s7 = scalar_lea.vmem %s153_s28, 256  ;;  %p243_p6 = scmp.lt.s32.totalorder %s153_s28, %s153_s28 }
  0x15   :  { %210 = vpow2.f32 %v131_v13  ;;  %p239_p5 = scmp.ne.s32.totalorder %s153_s28, %s238_s7  ;;  %p244_p7 = scmp.lt.s32.totalorder %s238_s7, %s238_s7 }
  0x16   :  { %78 = vmatpush1.bf16.msra.mxu0 %v209_v4 }
  0x17   :  { %p245_p8 = por %p244_p7, %p243_p6 }
  0x19   :  { %192 = vmatmul.mubr.msk.bf16.vlgmr.msra.gmra.mxu0 %vm59_vm0, %v34_v5  ;;  %p246_p9 = pnand %p245_p8, %p239_p5 }
  0x22   :  { %v211_v14 = vpop.eup %210 }
  0x23   :  { %139 = vperm.xlu1 %202, %v211_v14  }
  0x9e   :  { %v140_v25 = vpop.permute.xlu1 %139 }
  0xd9   :  { %v97_v6 = vpop.f32.mrf.mxu0 }
  0xdb   :  { %v99_v7 = vpop.f32.mrf.mxu0 }
  0xdc   :  { %v194_v8 = vpack.c.bf16 %v99_v7, %v97_v6  ;;  %v113_v9 = vmax.f32 %v97_v6, %v99_v7 }
  0xdd   :  { %v101_v10 = vpop.f32.mrf.mxu0 }
  0xde   :  { %112 = vst [vmem:[#allocation8] sm:$0xff] %v194_v8  ;;  %114 = vmax.xlane.f32.xlu0 %v113_v9 }
  0xdf   :  { %v102_v11 = vpop.f32.mrf.mxu0 }
 0x167   :  { %v115_v15 = vpop.xlane.xlu0 %114 }
 0x168   :  { %v116_v16 = vsub.f32 %v97_v6, %v115_v15  ;;  %v117_v17 = vsub.f32 %v99_v7, %v115_v15 }
 0x16a   :  { %v118_v18 = vmul.f32 1.442695, %v116_v16  ;;  %v120_v19 = vmul.f32 1.442695, %v117_v17 }
 0x16c   :  { %212 = vpow2.f32 %v118_v18 }
 0x16d   :  { %214 = vpow2.f32 %v120_v19 }
 0x179   :  { %v213_v20 = vpop.eup %212 }
 0x17a   :  { %v215_v21 = vpop.eup %214 }
 0x17b   :  { %v126_v22 = vadd.f32 %v215_v21, %v213_v20 }
 0x17d   :  { %127 = vadd.xlane.f32.xlu0 %v126_v22 }
 0x206   :  { %v128_v23 = vpop.xlane.xlu0 %127 }
 0x207   :  { %216 = vrcp.f32 %v128_v23 }
 0x214   :  { %v217_v24 = vpop.eup %216 }
 0x215   :  { %v133_v26 = vmul.f32 %v217_v24, %v213_v20  ;;  %v134_v27 = vmul.f32 %v217_v24, %v215_v21 }
 0x217   :  { %v142_v28 = vmul.f32 %v140_v25, %v133_v26  ;;  %v143_v29 = vmul.f32 %v140_v25, %v134_v27  ;;  %135 = vst [vmem:[#allocation5] sm:$0xff] %v133_v26  ;;  %136 = vst [vmem:[#allocation5 + $0x8] sm:$0xff] %v134_v27 }
 0x218   :  { %249 = shalt.err (!%p246_p9)
}
 0x219   :  { %155 = dma.vmem_to_hbm [thread:$0]  %s153_s28, 256, %s362_s3, [#allocation4]   ;;  %144 = vst [vmem:[#allocation6] sm:$0xff] %v142_v28  ;;  %145 = vst [vmem:[#allocation6 + $0x8] sm:$0xff] %v143_v29 }
 0x21a   :  { %s258_s10 = scalar_lea.vmem %s163_s29, 256  ;;  %p263_p11 = scmp.lt.s32.totalorder %s163_s29, %s163_s29 }
 0x21b   :  { %p259_p10 = scmp.ne.s32.totalorder %s163_s29, %s258_s10  ;;  %p264_p12 = scmp.lt.s32.totalorder %s258_s10, %s258_s10 }
 0x21d   :  { %p265_p13 = por %p264_p12, %p263_p11 }
 0x21f   :  { %p266_p0 = pnand %p265_p13, %p259_p10 }
 0x221   :  { %269 = shalt.err (!%p266_p0)
}
 0x222   :  { %165 = dma.vmem_to_hbm [thread:$0]  %s163_s29, 256, %s363_s4, [#allocation7]  }
 0x223   :  { %s278_s13 = scalar_lea.vmem %s173_s6, 128  ;;  %p283_p2 = scmp.lt.s32.totalorder %s173_s6, %s173_s6 }
 0x224   :  { %p279_p1 = scmp.ne.s32.totalorder %s173_s6, %s278_s13  ;;  %p284_p3 = scmp.lt.s32.totalorder %s278_s13, %s278_s13 }
 0x226   :  { %p285_p4 = por %p284_p3, %p283_p2 }
 0x228   :  { %p286_p5 = pnand %p285_p4, %p279_p1 }
 0x22a   :  { %289 = shalt.err (!%p286_p5)
}
 0x22b   :  { %175 = dma.vmem_to_hbm [thread:$0]  %s173_s6, 128, %s364_s5, [#allocation7]  }
 0x22c   :  { %300 = dma.done.wait [#allocation4], 256  }
 0x22d   :  { %301 = vsyncadd [#allocation4], 4294967040 }
 0x22e   :  { %302 = dma.done.wait [#allocation7], 384  }
 0x22f   :  { %303 = vsyncadd [#allocation7], 4294966912 }
 0x230   :  { %185 = vsyncpa [#allocation3], 1 }
 0x231   :  { %186 = vsyncpa [#allocation4], 1 }
 0x232   :  { %187 = vsyncpa [#allocation7], 1 }

</bundles_post_ra>
